<compile_context>
chip_gen: v6e
topology: v6e:2x2x1
jax: 0.10.0
libtpu: 0.0.40
codegen_flags: <defaults>
</compile_context>

<pallas_src>
import functools
import math

import jax
import jax.numpy as jnp
from jax import lax
from jax.experimental import pallas as pl
from jax.experimental.pallas import tpu as pltpu


# Large-but-finite mask value (avoids inf-inf NaN paths); every kv tile is
# guaranteed to contain at least one valid column, so exp(mask - m) == 0.
_MASK_VALUE = -0.7 * float(jnp.finfo(jnp.float32).max)


def _flash_attention_kernel(q_ref, k_ref, v_ref, o_ref,
                            m_ref, l_ref, acc_ref, *,
                            num_heads: int, head_dim: int, scale: float,
                            kv_seq_len: int, block_k: int,
                            needs_kv_mask: bool, exp_in_bf16: bool):
    """One (batch, q_tile, kv_tile) grid step; all heads handled in-kernel.

    q_ref/o_ref: (Tq, hidden)   k_ref/v_ref: (Tk, hidden)
    m_ref/l_ref: (H, Tq, 1) f32 running max / normalizer
    acc_ref:     (H, Tq, head_dim) f32 output accumulator
    """
    kv_idx = pl.program_id(2)

    @pl.when(kv_idx == 0)
    def _init():
        m_ref[...] = jnp.full_like(m_ref, -jnp.inf)
        l_ref[...] = jnp.zeros_like(l_ref)
        acc_ref[...] = jnp.zeros_like(acc_ref)

    # Fold 1/sqrt(D) into Q once per step (Tq*hidden elements) instead of
    # scaling every (Tq,Tk) score tile (H*Tq*Tk elements) -> relieves VALU.
    q = (q_ref[...] * scale).astype(q_ref.dtype)   # native dtype -> fast MXU
    k = k_ref[...]
    v = v_ref[...]

    if needs_kv_mask:
        col = kv_idx * block_k + lax.broadcasted_iota(jnp.int32, (1, block_k), 1)
        kv_valid = col < kv_seq_len                              # (1, Tk)
    else:
        kv_valid = None

    for h in range(num_heads):                       # static unroll over heads
        sl = slice(h * head_dim, (h + 1) * head_dim)
        q_h = q[:, sl]
        k_h = k[:, sl]
        v_h = v[:, sl]

        # scores = Q_h K_h^T : contract head_dim axes directly (no k.T copy).
        s = lax.dot_general(q_h, k_h, (((1,), (1,)), ((), ())),
                            preferred_element_type=jnp.float32)  # (Tq,Tk) f32
        if kv_valid is not None:
            s = jnp.where(kv_valid, s, _MASK_VALUE)

        m_prev = m_ref[h]                                        # (Tq, 1)
        m_new = jnp.maximum(m_prev, jnp.max(s, axis=-1, keepdims=True))
        alpha = jnp.exp(m_prev - m_new)              # rescale older partials

        if exp_in_bf16:
            # v6e/v7x bf16 EUP: ~2x exp throughput and no separate f32->bf16
            # cast before the P@V matmul; row-sum still accumulated in f32.
            p = jnp.exp((s - m_new).astype(jnp.bfloat16))        # (Tq,Tk) bf16
            p_sum = jnp.sum(p.astype(jnp.float32), axis=-1, keepdims=True)
            pv = jnp.dot(p, v_h, preferred_element_type=jnp.float32)
        else:
            p = jnp.exp(s - m_new)                               # (Tq,Tk) f32
            p_sum = jnp.sum(p, axis=-1, keepdims=True)
            pv = jnp.dot(p.astype(v_h.dtype), v_h,
                         preferred_element_type=jnp.float32)

        l_ref[h] = alpha * l_ref[h] + p_sum
        acc_ref[h] = alpha * acc_ref[h] + pv
        m_ref[h] = m_new

    @pl.when(kv_idx == pl.num_programs(2) - 1)
    def _finalize():
        outs = []
        for h in range(num_heads):
            # Runs once per q tile -> exact division (approx reciprocal adds
            # error with zero speedup here).
            outs.append((acc_ref[h] / l_ref[h]).astype(o_ref.dtype))
        o_ref[...] = jnp.concatenate(outs, axis=-1)   # single lane-dense store


def _tpu_generation():
    try:
        kind = jax.devices()[0].device_kind.lower()
    except Exception:
        return None
    for g in (7, 6, 5, 4):
        if f"v{g}" in kind:
            return g
    return None


def _vmem_limit_bytes(gen):
    try:
        cap = int(pltpu.get_tpu_info().vmem_capacity_bytes)
        return (cap * 3) // 4                 # leave headroom below physical
    except Exception:
        pass
    if gen is not None and gen >= 7:
        return 48 * 1024 * 1024               # v7x: 64 MiB VMEM per TC
    if gen in (5, 6):
        return 96 * 1024 * 1024               # v5e/v6e: 128 MiB VMEM
    return 64 * 1024 * 1024


def flash_attention_engine(query, key, value, *, num_heads: int,
                           tile_q: int = 512, tile_k: int = 1024):
    """Reproduces FlashAttentionEngine.forward for (B, S, hidden) inputs."""
    batch, seq_len, hidden_dim = query.shape
    assert hidden_dim % num_heads == 0
    head_dim = hidden_dim // num_heads
    scale = 1.0 / math.sqrt(head_dim)

    gen = _tpu_generation()

    def _round_up(x, m):
        return ((x + m - 1) // m) * m

    # Big tiles amortize per-step overhead and KV re-streaming; short
    # sequences use a single (padded) tile.  Defaults are multiples of 256
    # for the 256-wide MXU on v6e/v7x.
    tq = tile_q if seq_len >= tile_q else _round_up(seq_len, 8)
    tk = tile_k if seq_len >= tile_k else _round_up(seq_len, 8)

    padded_q_len = _round_up(seq_len, tq)
    padded_kv_len = _round_up(seq_len, tk)

    def _pad_seq(x, target):
        if target == seq_len:
            return x
        return jnp.pad(x, ((0, 0), (0, target - seq_len), (0, 0)))

    q = _pad_seq(query, padded_q_len)
    k = _pad_seq(key, padded_kv_len)
    v = _pad_seq(value, padded_kv_len)

    # bf16 exp only where the EUP supports it natively (v6e/v7x) and the model
    # already runs in bf16; keeps f32-input results bit-faithful.
    exp_in_bf16 = (query.dtype == jnp.bfloat16) and (gen is not None and gen >= 6)
    # TODO(synk): optional bf16 matmul-operand cast for f32 models on v5e
    # (fast MXU path) — left off by default to preserve f32 accuracy.

    kernel = functools.partial(
        _flash_attention_kernel,
        num_heads=num_heads, head_dim=head_dim, scale=scale,
        kv_seq_len=seq_len, block_k=tk,
        needs_kv_mask=(padded_kv_len != seq_len),
        exp_in_bf16=exp_in_bf16)

    # Last two block dims are (tile, hidden): tile is a multiple of 8 and
    # hidden equals the full last dim -> (8,128) tiling rule satisfied, and
    # the output block is lane-dense (no masked partial stores).
    qo_spec = pl.BlockSpec((pl.Squeezed(), tq, hidden_dim),
                           lambda b, qi, ki: (b, qi, 0))
    kv_spec = pl.BlockSpec((pl.Squeezed(), tk, hidden_dim),
                           lambda b, qi, ki: (b, ki, 0))

    num_q_tiles = padded_q_len // tq
    num_kv_tiles = padded_kv_len // tk
    grid = (batch, num_q_tiles, num_kv_tiles)

    itemsize = jnp.dtype(query.dtype).itemsize
    cost = pl.CostEstimate(
        flops=int(4 * batch * num_heads * seq_len * seq_len * head_dim),
        transcendentals=int(batch * num_heads * seq_len * seq_len),
        bytes_accessed=int(
            2 * batch * padded_q_len * hidden_dim * itemsize            # Q + O
            + 2 * batch * padded_kv_len * hidden_dim * itemsize * num_q_tiles),
    )

    out = pl.pallas_call(
        kernel,
        out_shape=jax.ShapeDtypeStruct((batch, padded_q_len, hidden_dim),
                                       query.dtype),
        grid_spec=pltpu.PrefetchScalarGridSpec(
            num_scalar_prefetch=0,
            grid=grid,
            in_specs=[qo_spec, kv_spec, kv_spec],
            out_specs=qo_spec,
            scratch_shapes=[
                pltpu.VMEM((num_heads, tq, 1), jnp.float32),         # m
                pltpu.VMEM((num_heads, tq, 1), jnp.float32),         # l
                pltpu.VMEM((num_heads, tq, head_dim), jnp.float32),  # acc
            ],
        ),
        compiler_params=pltpu.CompilerParams(
            dimension_semantics=("parallel", "parallel", "arbitrary"),
            vmem_limit_bytes=_vmem_limit_bytes(gen),
        ),
        cost_estimate=cost,
    )(q, k, v)

    if padded_q_len != seq_len:
        out = out[:, :seq_len, :]
    return out


def _reference_attention(query, key, value, *, num_heads: int):
    """Pure-JAX reference mirroring the PyTorch module exactly."""
    batch, seq_len, hidden_dim = query.shape
    head_dim = hidden_dim // num_heads

    def to_bhsd(x):
        return x.reshape(batch, seq_len, num_heads, head_dim).transpose(0, 2, 1, 3)

    q, k, v = to_bhsd(query), to_bhsd(key), to_bhsd(value)
    scores = jnp.einsum("bhqd,bhkd->bhqk", q, k) / math.sqrt(head_dim)
    attn = jax.nn.softmax(scores, axis=-1)
    out = jnp.einsum("bhqk,bhkd->bhqd", attn, v)
    return out.transpose(0, 2, 1, 3).reshape(batch, seq_len, hidden_dim)


if __name__ == "__main__":
    batch, hidden_dim, num_heads = 2, 32, 4
    key0 = jax.random.PRNGKey(0)

    # Test 1: toy size, single tile (no padding, no mask).
    seq_len = 8
    kq, kk, kv = jax.random.split(key0, 3)
    query = jax.random.normal(kq, (batch, seq_len, hidden_dim), dtype=jnp.float32)
    key_ = jax.random.normal(kk, (batch, seq_len, hidden_dim), dtype=jnp.float32)
    value = jax.random.normal(kv, (batch, seq_len, hidden_dim), dtype=jnp.float32)

    out = flash_attention_engine(query, key_, value, num_heads=num_heads)
    out = jax.block_until_ready(out)
    ref = _reference_attention(query, key_, value, num_heads=num_heads)
    assert out.shape == (batch, seq_len, hidden_dim)
    assert jnp.allclose(out, ref, atol=2e-3, rtol=2e-3)

    # Test 2: multiple q / kv tiles (seq=32, tiles=8) to exercise the online
    # softmax init / accumulate / finalize path across grid steps.
    seq_len2 = 32
    kq2, kk2, kv2 = jax.random.split(jax.random.PRNGKey(0), 3)
    q2 = jax.random.normal(kq2, (batch, seq_len2, hidden_dim), dtype=jnp.float32)
    k2 = jax.random.normal(kk2, (batch, seq_len2, hidden_dim), dtype=jnp.float32)
    v2 = jax.random.normal(kv2, (batch, seq_len2, hidden_dim), dtype=jnp.float32)

    out2 = flash_attention_engine(q2, k2, v2, num_heads=num_heads,
                                  tile_q=8, tile_k=8)
    out2 = jax.block_until_ready(out2)
    ref2 = _reference_attention(q2, k2, v2, num_heads=num_heads)
    assert out2.shape == (batch, seq_len2, hidden_dim)
    assert jnp.allclose(out2, ref2, atol=2e-3, rtol=2e-3)

    # Test 3: non-divisible seq (20) -> padded to 24 with masked padded keys.
    seq_len3 = 20
    kq3, kk3, kv3 = jax.random.split(jax.random.PRNGKey(0), 3)
    q3 = jax.random.normal(kq3, (batch, seq_len3, hidden_dim), dtype=jnp.float32)
    k3 = jax.random.normal(kk3, (batch, seq_len3, hidden_dim), dtype=jnp.float32)
    v3 = jax.random.normal(kv3, (batch, seq_len3, hidden_dim), dtype=jnp.float32)

    out3 = flash_attention_engine(q3, k3, v3, num_heads=num_heads,
                                  tile_q=8, tile_k=8)
    out3 = jax.block_until_ready(out3)
    ref3 = _reference_attention(q3, k3, v3, num_heads=num_heads)
    assert out3.shape == (batch, seq_len3, hidden_dim)
    assert jnp.allclose(out3, ref3, atol=2e-3, rtol=2e-3)

    print("KERNEL_OK")
</pallas_src>

<mosaic_0001>
module attributes {stable_mosaic.version = 11 : i64} {
  func.func @_flash_attention_kernel(%arg0: i32, %arg1: i32, %arg2: i32, %arg3: memref<1x8x32xf32, #tpu.memory_space<vmem>>, %arg4: memref<1x8x32xf32, #tpu.memory_space<vmem>>, %arg5: memref<1x8x32xf32, #tpu.memory_space<vmem>>, %arg6: memref<1x8x32xf32, #tpu.memory_space<vmem>>, %arg7: memref<4x8x1xf32, #tpu.memory_space<vmem>>, %arg8: memref<4x8x1xf32, #tpu.memory_space<vmem>>, %arg9: memref<4x8x8xf32, #tpu.memory_space<vmem>>) attributes {dimension_semantics = [#tpu.dimension_semantics<parallel>, #tpu.dimension_semantics<parallel>, #tpu.dimension_semantics<arbitrary>], iteration_bounds = array<i64: 2, 1, 1>, scalar_prefetch = 0 : i64, scratch_operands = 3 : i64, tpu.core_type = #tpu.core_type<tc>, window_params = [{transform_indices = @transform_0, window_bounds = array<i64: 1, 8, 32>}, {transform_indices = @transform_1, window_bounds = array<i64: 1, 8, 32>}, {transform_indices = @transform_2, window_bounds = array<i64: 1, 8, 32>}, {transform_indices = @transform_3, window_bounds = array<i64: 1, 8, 32>}]} {
    %c0_i32 = arith.constant 0 : i32
    %0 = arith.cmpi eq, %arg2, %c0_i32 : i32
    %1 = arith.extui %0 : i1 to i32
    %c0_i32_0 = arith.constant 0 : i32
    %2 = arith.cmpi ne, %1, %c0_i32_0 : i32
    scf.if %2 {
      %cst_96 = arith.constant 0xFF800000 : f32
      %154 = vector.broadcast %cst_96 : f32 to vector<4x8x1xf32>
      %c0_97 = arith.constant 0 : index
      %c0_98 = arith.constant 0 : index
      %c0_99 = arith.constant 0 : index
      %155 = vector.load %arg7[%c0_97, %c0_98, %c0_99] : memref<4x8x1xf32, #tpu.memory_space<vmem>>, vector<4x8x1xf32>
      tpu.vector_store %arg7[%c0_97, %c0_98, %c0_99], %154 {strides = array<i32>} : memref<4x8x1xf32, #tpu.memory_space<vmem>>, vector<4x8x1xf32>,
      %cst_100 = arith.constant 0.000000e+00 : f32
      %156 = vector.broadcast %cst_100 : f32 to vector<4x8x1xf32>
      %c0_101 = arith.constant 0 : index
      %c0_102 = arith.constant 0 : index
      %c0_103 = arith.constant 0 : index
      %157 = vector.load %arg8[%c0_101, %c0_102, %c0_103] : memref<4x8x1xf32, #tpu.memory_space<vmem>>, vector<4x8x1xf32>
      tpu.vector_store %arg8[%c0_101, %c0_102, %c0_103], %156 {strides = array<i32>} : memref<4x8x1xf32, #tpu.memory_space<vmem>>, vector<4x8x1xf32>,
      %cst_104 = arith.constant 0.000000e+00 : f32
      %158 = vector.broadcast %cst_104 : f32 to vector<4x8x8xf32>
      %c0_105 = arith.constant 0 : index
      %c0_106 = arith.constant 0 : index
      %c0_107 = arith.constant 0 : index
      %159 = vector.load %arg9[%c0_105, %c0_106, %c0_107] : memref<4x8x8xf32, #tpu.memory_space<vmem>>, vector<4x8x8xf32>
      tpu.vector_store %arg9[%c0_105, %c0_106, %c0_107], %158 {strides = array<i32>} : memref<4x8x8xf32, #tpu.memory_space<vmem>>, vector<4x8x8xf32>,
    } else {
    }
    %c0 = arith.constant 0 : index
    %c0_1 = arith.constant 0 : index
    %c0_2 = arith.constant 0 : index
    %3 = vector.load %arg3[%c0, %c0_1, %c0_2] : memref<1x8x32xf32, #tpu.memory_space<vmem>>, vector<1x8x32xf32>
    %4 = vector.shape_cast %3 : vector<1x8x32xf32> to vector<8x32xf32>
    %cst = arith.constant 0.353553385 : f32
    %5 = vector.broadcast %cst : f32 to vector<8x32xf32>
    %6 = arith.mulf %4, %5 : vector<8x32xf32>
    %c0_3 = arith.constant 0 : index
    %c0_4 = arith.constant 0 : index
    %c0_5 = arith.constant 0 : index
    %7 = vector.load %arg4[%c0_3, %c0_4, %c0_5] : memref<1x8x32xf32, #tpu.memory_space<vmem>>, vector<1x8x32xf32>
    %8 = vector.shape_cast %7 : vector<1x8x32xf32> to vector<8x32xf32>
    %c0_6 = arith.constant 0 : index
    %c0_7 = arith.constant 0 : index
    %c0_8 = arith.constant 0 : index
    %9 = vector.load %arg5[%c0_6, %c0_7, %c0_8] : memref<1x8x32xf32, #tpu.memory_space<vmem>>, vector<1x8x32xf32>
    %10 = vector.shape_cast %9 : vector<1x8x32xf32> to vector<8x32xf32>
    %11 = vector.extract_strided_slice %6 {offsets = [0, 0], sizes = [8, 8], strides = [1, 1]} : vector<8x32xf32> to vector<8x8xf32>
    %12 = vector.extract_strided_slice %8 {offsets = [0, 0], sizes = [8, 8], strides = [1, 1]} : vector<8x32xf32> to vector<8x8xf32>
    %13 = vector.extract_strided_slice %10 {offsets = [0, 0], sizes = [8, 8], strides = [1, 1]} : vector<8x32xf32> to vector<8x8xf32>
    %cst_9 = arith.constant dense<0.000000e+00> : vector<8x8xf32>
    %14 = tpu.matmul %11, %12, %cst_9 {dimension_numbers = #tpu.dot_dimension_numbers<[1], [1], [0], [0], [0, 0, 1, 0], [], []>} : vector<8x8xf32>, vector<8x8xf32>, vector<8x8xf32> -> vector<8x8xf32>
    %c0_10 = arith.constant 0 : index
    %c0_11 = arith.constant 0 : index
    %c0_12 = arith.constant 0 : index
    %15 = vector.load %arg7[%c0_10, %c0_11, %c0_12] : memref<4x8x1xf32, #tpu.memory_space<vmem>>, vector<1x8x1xf32>
    %16 = vector.shape_cast %15 : vector<1x8x1xf32> to vector<8x1xf32>
    %cst_13 = arith.constant dense<0xFF800000> : vector<8xf32>
    %17 = vector.multi_reduction <maximumf>, %14, %cst_13 [1] : vector<8x8xf32> to vector<8xf32>
    %18 = vector.shape_cast %17 : vector<8xf32> to vector<8x1xf32>
    %19 = arith.maximumf %16, %18 : vector<8x1xf32>
    %20 = arith.subf %16, %19 : vector<8x1xf32>
    %21 = math.exp %20 : vector<8x1xf32>
    %22 = vector.broadcast %19 : vector<8x1xf32> to vector<8x8xf32>
    %23 = arith.subf %14, %22 : vector<8x8xf32>
    %24 = math.exp %23 : vector<8x8xf32>
    %cst_14 = arith.constant dense<0.000000e+00> : vector<8xf32>
    %25 = vector.multi_reduction <add>, %24, %cst_14 [1] : vector<8x8xf32> to vector<8xf32>
    %26 = vector.shape_cast %25 : vector<8xf32> to vector<8x1xf32>
    %cst_15 = arith.constant dense<0.000000e+00> : vector<8x8xf32>
    %27 = tpu.matmul %24, %13, %cst_15 {dimension_numbers = #tpu.dot_dimension_numbers<[1], [0], [0], [1], [0, 0, 1, 1], [], []>} : vector<8x8xf32>, vector<8x8xf32>, vector<8x8xf32> -> vector<8x8xf32>
    %c0_16 = arith.constant 0 : index
    %c0_17 = arith.constant 0 : index
    %c0_18 = arith.constant 0 : index
    %28 = vector.load %arg8[%c0_16, %c0_17, %c0_18] : memref<4x8x1xf32, #tpu.memory_space<vmem>>, vector<1x8x1xf32>
    %29 = vector.shape_cast %28 : vector<1x8x1xf32> to vector<8x1xf32>
    %30 = arith.mulf %21, %29 : vector<8x1xf32>
    %31 = arith.addf %30, %26 : vector<8x1xf32>
    %c0_19 = arith.constant 0 : index
    %c0_20 = arith.constant 0 : index
    %c0_21 = arith.constant 0 : index
    %32 = vector.load %arg8[%c0_19, %c0_20, %c0_21] : memref<4x8x1xf32, #tpu.memory_space<vmem>>, vector<1x8x1xf32>
    %33 = vector.shape_cast %32 : vector<1x8x1xf32> to vector<8x1xf32>
    %34 = vector.shape_cast %31 : vector<8x1xf32> to vector<1x8x1xf32>
    tpu.vector_store %arg8[%c0_19, %c0_20, %c0_21], %34 {strides = array<i32>} : memref<4x8x1xf32, #tpu.memory_space<vmem>>, vector<1x8x1xf32>,
    %c0_22 = arith.constant 0 : index
    %c0_23 = arith.constant 0 : index
    %c0_24 = arith.constant 0 : index
    %35 = vector.load %arg9[%c0_22, %c0_23, %c0_24] : memref<4x8x8xf32, #tpu.memory_space<vmem>>, vector<1x8x8xf32>
    %36 = vector.shape_cast %35 : vector<1x8x8xf32> to vector<8x8xf32>
    %37 = vector.broadcast %21 : vector<8x1xf32> to vector<8x8xf32>
    %38 = arith.mulf %37, %36 : vector<8x8xf32>
    %39 = arith.addf %38, %27 : vector<8x8xf32>
    %c0_25 = arith.constant 0 : index
    %c0_26 = arith.constant 0 : index
    %c0_27 = arith.constant 0 : index
    %40 = vector.load %arg9[%c0_25, %c0_26, %c0_27] : memref<4x8x8xf32, #tpu.memory_space<vmem>>, vector<1x8x8xf32>
    %41 = vector.shape_cast %40 : vector<1x8x8xf32> to vector<8x8xf32>
    %42 = vector.shape_cast %39 : vector<8x8xf32> to vector<1x8x8xf32>
    tpu.vector_store %arg9[%c0_25, %c0_26, %c0_27], %42 {strides = array<i32>} : memref<4x8x8xf32, #tpu.memory_space<vmem>>, vector<1x8x8xf32>,
    %c0_28 = arith.constant 0 : index
    %c0_29 = arith.constant 0 : index
    %c0_30 = arith.constant 0 : index
    %43 = vector.load %arg7[%c0_28, %c0_29, %c0_30] : memref<4x8x1xf32, #tpu.memory_space<vmem>>, vector<1x8x1xf32>
    %44 = vector.shape_cast %43 : vector<1x8x1xf32> to vector<8x1xf32>
    %45 = vector.shape_cast %19 : vector<8x1xf32> to vector<1x8x1xf32>
    tpu.vector_store %arg7[%c0_28, %c0_29, %c0_30], %45 {strides = array<i32>} : memref<4x8x1xf32, #tpu.memory_space<vmem>>, vector<1x8x1xf32>,
    %46 = vector.extract_strided_slice %6 {offsets = [0, 8], sizes = [8, 8], strides = [1, 1]} : vector<8x32xf32> to vector<8x8xf32>
    %47 = vector.extract_strided_slice %8 {offsets = [0, 8], sizes = [8, 8], strides = [1, 1]} : vector<8x32xf32> to vector<8x8xf32>
    %48 = vector.extract_strided_slice %10 {offsets = [0, 8], sizes = [8, 8], strides = [1, 1]} : vector<8x32xf32> to vector<8x8xf32>
    %cst_31 = arith.constant dense<0.000000e+00> : vector<8x8xf32>
    %49 = tpu.matmul %46, %47, %cst_31 {dimension_numbers = #tpu.dot_dimension_numbers<[1], [1], [0], [0], [0, 0, 1, 0], [], []>} : vector<8x8xf32>, vector<8x8xf32>, vector<8x8xf32> -> vector<8x8xf32>
    %c1 = arith.constant 1 : index
    %c0_32 = arith.constant 0 : index
    %c0_33 = arith.constant 0 : index
    %50 = vector.load %arg7[%c1, %c0_32, %c0_33] : memref<4x8x1xf32, #tpu.memory_space<vmem>>, vector<1x8x1xf32>
    %51 = vector.shape_cast %50 : vector<1x8x1xf32> to vector<8x1xf32>
    %cst_34 = arith.constant dense<0xFF800000> : vector<8xf32>
    %52 = vector.multi_reduction <maximumf>, %49, %cst_34 [1] : vector<8x8xf32> to vector<8xf32>
    %53 = vector.shape_cast %52 : vector<8xf32> to vector<8x1xf32>
    %54 = arith.maximumf %51, %53 : vector<8x1xf32>
    %55 = arith.subf %51, %54 : vector<8x1xf32>
    %56 = math.exp %55 : vector<8x1xf32>
    %57 = vector.broadcast %54 : vector<8x1xf32> to vector<8x8xf32>
    %58 = arith.subf %49, %57 : vector<8x8xf32>
    %59 = math.exp %58 : vector<8x8xf32>
    %cst_35 = arith.constant dense<0.000000e+00> : vector<8xf32>
    %60 = vector.multi_reduction <add>, %59, %cst_35 [1] : vector<8x8xf32> to vector<8xf32>
    %61 = vector.shape_cast %60 : vector<8xf32> to vector<8x1xf32>
    %cst_36 = arith.constant dense<0.000000e+00> : vector<8x8xf32>
    %62 = tpu.matmul %59, %48, %cst_36 {dimension_numbers = #tpu.dot_dimension_numbers<[1], [0], [0], [1], [0, 0, 1, 1], [], []>} : vector<8x8xf32>, vector<8x8xf32>, vector<8x8xf32> -> vector<8x8xf32>
    %c1_37 = arith.constant 1 : index
    %c0_38 = arith.constant 0 : index
    %c0_39 = arith.constant 0 : index
    %63 = vector.load %arg8[%c1_37, %c0_38, %c0_39] : memref<4x8x1xf32, #tpu.memory_space<vmem>>, vector<1x8x1xf32>
    %64 = vector.shape_cast %63 : vector<1x8x1xf32> to vector<8x1xf32>
    %65 = arith.mulf %56, %64 : vector<8x1xf32>
    %66 = arith.addf %65, %61 : vector<8x1xf32>
    %c1_40 = arith.constant 1 : index
    %c0_41 = arith.constant 0 : index
    %c0_42 = arith.constant 0 : index
    %67 = vector.load %arg8[%c1_40, %c0_41, %c0_42] : memref<4x8x1xf32, #tpu.memory_space<vmem>>, vector<1x8x1xf32>
    %68 = vector.shape_cast %67 : vector<1x8x1xf32> to vector<8x1xf32>
    %69 = vector.shape_cast %66 : vector<8x1xf32> to vector<1x8x1xf32>
    tpu.vector_store %arg8[%c1_40, %c0_41, %c0_42], %69 {strides = array<i32>} : memref<4x8x1xf32, #tpu.memory_space<vmem>>, vector<1x8x1xf32>,
    %c1_43 = arith.constant 1 : index
    %c0_44 = arith.constant 0 : index
    %c0_45 = arith.constant 0 : index
    %70 = vector.load %arg9[%c1_43, %c0_44, %c0_45] : memref<4x8x8xf32, #tpu.memory_space<vmem>>, vector<1x8x8xf32>
    %71 = vector.shape_cast %70 : vector<1x8x8xf32> to vector<8x8xf32>
    %72 = vector.broadcast %56 : vector<8x1xf32> to vector<8x8xf32>
    %73 = arith.mulf %72, %71 : vector<8x8xf32>
    %74 = arith.addf %73, %62 : vector<8x8xf32>
    %c1_46 = arith.constant 1 : index
    %c0_47 = arith.constant 0 : index
    %c0_48 = arith.constant 0 : index
    %75 = vector.load %arg9[%c1_46, %c0_47, %c0_48] : memref<4x8x8xf32, #tpu.memory_space<vmem>>, vector<1x8x8xf32>
    %76 = vector.shape_cast %75 : vector<1x8x8xf32> to vector<8x8xf32>
    %77 = vector.shape_cast %74 : vector<8x8xf32> to vector<1x8x8xf32>
    tpu.vector_store %arg9[%c1_46, %c0_47, %c0_48], %77 {strides = array<i32>} : memref<4x8x8xf32, #tpu.memory_space<vmem>>, vector<1x8x8xf32>,
    %c1_49 = arith.constant 1 : index
    %c0_50 = arith.constant 0 : index
    %c0_51 = arith.constant 0 : index
    %78 = vector.load %arg7[%c1_49, %c0_50, %c0_51] : memref<4x8x1xf32, #tpu.memory_space<vmem>>, vector<1x8x1xf32>
    %79 = vector.shape_cast %78 : vector<1x8x1xf32> to vector<8x1xf32>
    %80 = vector.shape_cast %54 : vector<8x1xf32> to vector<1x8x1xf32>
    tpu.vector_store %arg7[%c1_49, %c0_50, %c0_51], %80 {strides = array<i32>} : memref<4x8x1xf32, #tpu.memory_space<vmem>>, vector<1x8x1xf32>,
    %81 = vector.extract_strided_slice %6 {offsets = [0, 16], sizes = [8, 8], strides = [1, 1]} : vector<8x32xf32> to vector<8x8xf32>
    %82 = vector.extract_strided_slice %8 {offsets = [0, 16], sizes = [8, 8], strides = [1, 1]} : vector<8x32xf32> to vector<8x8xf32>
    %83 = vector.extract_strided_slice %10 {offsets = [0, 16], sizes = [8, 8], strides = [1, 1]} : vector<8x32xf32> to vector<8x8xf32>
    %cst_52 = arith.constant dense<0.000000e+00> : vector<8x8xf32>
    %84 = tpu.matmul %81, %82, %cst_52 {dimension_numbers = #tpu.dot_dimension_numbers<[1], [1], [0], [0], [0, 0, 1, 0], [], []>} : vector<8x8xf32>, vector<8x8xf32>, vector<8x8xf32> -> vector<8x8xf32>
    %c2 = arith.constant 2 : index
    %c0_53 = arith.constant 0 : index
    %c0_54 = arith.constant 0 : index
    %85 = vector.load %arg7[%c2, %c0_53, %c0_54] : memref<4x8x1xf32, #tpu.memory_space<vmem>>, vector<1x8x1xf32>
    %86 = vector.shape_cast %85 : vector<1x8x1xf32> to vector<8x1xf32>
    %cst_55 = arith.constant dense<0xFF800000> : vector<8xf32>
    %87 = vector.multi_reduction <maximumf>, %84, %cst_55 [1] : vector<8x8xf32> to vector<8xf32>
    %88 = vector.shape_cast %87 : vector<8xf32> to vector<8x1xf32>
    %89 = arith.maximumf %86, %88 : vector<8x1xf32>
    %90 = arith.subf %86, %89 : vector<8x1xf32>
    %91 = math.exp %90 : vector<8x1xf32>
    %92 = vector.broadcast %89 : vector<8x1xf32> to vector<8x8xf32>
    %93 = arith.subf %84, %92 : vector<8x8xf32>
    %94 = math.exp %93 : vector<8x8xf32>
    %cst_56 = arith.constant dense<0.000000e+00> : vector<8xf32>
    %95 = vector.multi_reduction <add>, %94, %cst_56 [1] : vector<8x8xf32> to vector<8xf32>
    %96 = vector.shape_cast %95 : vector<8xf32> to vector<8x1xf32>
    %cst_57 = arith.constant dense<0.000000e+00> : vector<8x8xf32>
    %97 = tpu.matmul %94, %83, %cst_57 {dimension_numbers = #tpu.dot_dimension_numbers<[1], [0], [0], [1], [0, 0, 1, 1], [], []>} : vector<8x8xf32>, vector<8x8xf32>, vector<8x8xf32> -> vector<8x8xf32>
    %c2_58 = arith.constant 2 : index
    %c0_59 = arith.constant 0 : index
    %c0_60 = arith.constant 0 : index
    %98 = vector.load %arg8[%c2_58, %c0_59, %c0_60] : memref<4x8x1xf32, #tpu.memory_space<vmem>>, vector<1x8x1xf32>
    %99 = vector.shape_cast %98 : vector<1x8x1xf32> to vector<8x1xf32>
    %100 = arith.mulf %91, %99 : vector<8x1xf32>
    %101 = arith.addf %100, %96 : vector<8x1xf32>
    %c2_61 = arith.constant 2 : index
    %c0_62 = arith.constant 0 : index
    %c0_63 = arith.constant 0 : index
    %102 = vector.load %arg8[%c2_61, %c0_62, %c0_63] : memref<4x8x1xf32, #tpu.memory_space<vmem>>, vector<1x8x1xf32>
    %103 = vector.shape_cast %102 : vector<1x8x1xf32> to vector<8x1xf32>
    %104 = vector.shape_cast %101 : vector<8x1xf32> to vector<1x8x1xf32>
    tpu.vector_store %arg8[%c2_61, %c0_62, %c0_63], %104 {strides = array<i32>} : memref<4x8x1xf32, #tpu.memory_space<vmem>>, vector<1x8x1xf32>,
    %c2_64 = arith.constant 2 : index
    %c0_65 = arith.constant 0 : index
    %c0_66 = arith.constant 0 : index
    %105 = vector.load %arg9[%c2_64, %c0_65, %c0_66] : memref<4x8x8xf32, #tpu.memory_space<vmem>>, vector<1x8x8xf32>
    %106 = vector.shape_cast %105 : vector<1x8x8xf32> to vector<8x8xf32>
    %107 = vector.broadcast %91 : vector<8x1xf32> to vector<8x8xf32>
    %108 = arith.mulf %107, %106 : vector<8x8xf32>
    %109 = arith.addf %108, %97 : vector<8x8xf32>
    %c2_67 = arith.constant 2 : index
    %c0_68 = arith.constant 0 : index
    %c0_69 = arith.constant 0 : index
    %110 = vector.load %arg9[%c2_67, %c0_68, %c0_69] : memref<4x8x8xf32, #tpu.memory_space<vmem>>, vector<1x8x8xf32>
    %111 = vector.shape_cast %110 : vector<1x8x8xf32> to vector<8x8xf32>
    %112 = vector.shape_cast %109 : vector<8x8xf32> to vector<1x8x8xf32>
    tpu.vector_store %arg9[%c2_67, %c0_68, %c0_69], %112 {strides = array<i32>} : memref<4x8x8xf32, #tpu.memory_space<vmem>>, vector<1x8x8xf32>,
    %c2_70 = arith.constant 2 : index
    %c0_71 = arith.constant 0 : index
    %c0_72 = arith.constant 0 : index
    %113 = vector.load %arg7[%c2_70, %c0_71, %c0_72] : memref<4x8x1xf32, #tpu.memory_space<vmem>>, vector<1x8x1xf32>
    %114 = vector.shape_cast %113 : vector<1x8x1xf32> to vector<8x1xf32>
    %115 = vector.shape_cast %89 : vector<8x1xf32> to vector<1x8x1xf32>
    tpu.vector_store %arg7[%c2_70, %c0_71, %c0_72], %115 {strides = array<i32>} : memref<4x8x1xf32, #tpu.memory_space<vmem>>, vector<1x8x1xf32>,
    %116 = vector.extract_strided_slice %6 {offsets = [0, 24], sizes = [8, 8], strides = [1, 1]} : vector<8x32xf32> to vector<8x8xf32>
    %117 = vector.extract_strided_slice %8 {offsets = [0, 24], sizes = [8, 8], strides = [1, 1]} : vector<8x32xf32> to vector<8x8xf32>
    %118 = vector.extract_strided_slice %10 {offsets = [0, 24], sizes = [8, 8], strides = [1, 1]} : vector<8x32xf32> to vector<8x8xf32>
    %cst_73 = arith.constant dense<0.000000e+00> : vector<8x8xf32>
    %119 = tpu.matmul %116, %117, %cst_73 {dimension_numbers = #tpu.dot_dimension_numbers<[1], [1], [0], [0], [0, 0, 1, 0], [], []>} : vector<8x8xf32>, vector<8x8xf32>, vector<8x8xf32> -> vector<8x8xf32>
    %c3 = arith.constant 3 : index
    %c0_74 = arith.constant 0 : index
    %c0_75 = arith.constant 0 : index
    %120 = vector.load %arg7[%c3, %c0_74, %c0_75] : memref<4x8x1xf32, #tpu.memory_space<vmem>>, vector<1x8x1xf32>
    %121 = vector.shape_cast %120 : vector<1x8x1xf32> to vector<8x1xf32>
    %cst_76 = arith.constant dense<0xFF800000> : vector<8xf32>
    %122 = vector.multi_reduction <maximumf>, %119, %cst_76 [1] : vector<8x8xf32> to vector<8xf32>
    %123 = vector.shape_cast %122 : vector<8xf32> to vector<8x1xf32>
    %124 = arith.maximumf %121, %123 : vector<8x1xf32>
    %125 = arith.subf %121, %124 : vector<8x1xf32>
    %126 = math.exp %125 : vector<8x1xf32>
    %127 = vector.broadcast %124 : vector<8x1xf32> to vector<8x8xf32>
    %128 = arith.subf %119, %127 : vector<8x8xf32>
    %129 = math.exp %128 : vector<8x8xf32>
    %cst_77 = arith.constant dense<0.000000e+00> : vector<8xf32>
    %130 = vector.multi_reduction <add>, %129, %cst_77 [1] : vector<8x8xf32> to vector<8xf32>
    %131 = vector.shape_cast %130 : vector<8xf32> to vector<8x1xf32>
    %cst_78 = arith.constant dense<0.000000e+00> : vector<8x8xf32>
    %132 = tpu.matmul %129, %118, %cst_78 {dimension_numbers = #tpu.dot_dimension_numbers<[1], [0], [0], [1], [0, 0, 1, 1], [], []>} : vector<8x8xf32>, vector<8x8xf32>, vector<8x8xf32> -> vector<8x8xf32>
    %c3_79 = arith.constant 3 : index
    %c0_80 = arith.constant 0 : index
    %c0_81 = arith.constant 0 : index
    %133 = vector.load %arg8[%c3_79, %c0_80, %c0_81] : memref<4x8x1xf32, #tpu.memory_space<vmem>>, vector<1x8x1xf32>
    %134 = vector.shape_cast %133 : vector<1x8x1xf32> to vector<8x1xf32>
    %135 = arith.mulf %126, %134 : vector<8x1xf32>
    %136 = arith.addf %135, %131 : vector<8x1xf32>
    %c3_82 = arith.constant 3 : index
    %c0_83 = arith.constant 0 : index
    %c0_84 = arith.constant 0 : index
    %137 = vector.load %arg8[%c3_82, %c0_83, %c0_84] : memref<4x8x1xf32, #tpu.memory_space<vmem>>, vector<1x8x1xf32>
    %138 = vector.shape_cast %137 : vector<1x8x1xf32> to vector<8x1xf32>
    %139 = vector.shape_cast %136 : vector<8x1xf32> to vector<1x8x1xf32>
    tpu.vector_store %arg8[%c3_82, %c0_83, %c0_84], %139 {strides = array<i32>} : memref<4x8x1xf32, #tpu.memory_space<vmem>>, vector<1x8x1xf32>,
    %c3_85 = arith.constant 3 : index
    %c0_86 = arith.constant 0 : index
    %c0_87 = arith.constant 0 : index
    %140 = vector.load %arg9[%c3_85, %c0_86, %c0_87] : memref<4x8x8xf32, #tpu.memory_space<vmem>>, vector<1x8x8xf32>
    %141 = vector.shape_cast %140 : vector<1x8x8xf32> to vector<8x8xf32>
    %142 = vector.broadcast %126 : vector<8x1xf32> to vector<8x8xf32>
    %143 = arith.mulf %142, %141 : vector<8x8xf32>
    %144 = arith.addf %143, %132 : vector<8x8xf32>
    %c3_88 = arith.constant 3 : index
    %c0_89 = arith.constant 0 : index
    %c0_90 = arith.constant 0 : index
    %145 = vector.load %arg9[%c3_88, %c0_89, %c0_90] : memref<4x8x8xf32, #tpu.memory_space<vmem>>, vector<1x8x8xf32>
    %146 = vector.shape_cast %145 : vector<1x8x8xf32> to vector<8x8xf32>
    %147 = vector.shape_cast %144 : vector<8x8xf32> to vector<1x8x8xf32>
    tpu.vector_store %arg9[%c3_88, %c0_89, %c0_90], %147 {strides = array<i32>} : memref<4x8x8xf32, #tpu.memory_space<vmem>>, vector<1x8x8xf32>,
    %c3_91 = arith.constant 3 : index
    %c0_92 = arith.constant 0 : index
    %c0_93 = arith.constant 0 : index
    %148 = vector.load %arg7[%c3_91, %c0_92, %c0_93] : memref<4x8x1xf32, #tpu.memory_space<vmem>>, vector<1x8x1xf32>
    %149 = vector.shape_cast %148 : vector<1x8x1xf32> to vector<8x1xf32>
    %150 = vector.shape_cast %124 : vector<8x1xf32> to vector<1x8x1xf32>
    tpu.vector_store %arg7[%c3_91, %c0_92, %c0_93], %150 {strides = array<i32>} : memref<4x8x1xf32, #tpu.memory_space<vmem>>, vector<1x8x1xf32>,
    %c0_i32_94 = arith.constant 0 : i32
    %151 = arith.cmpi eq, %arg2, %c0_i32_94 : i32
    %152 = arith.extui %151 : i1 to i32
    %c0_i32_95 = arith.constant 0 : i32
    %153 = arith.cmpi ne, %152, %c0_i32_95 : i32
    scf.if %153 {
      %c0_96 = arith.constant 0 : index
      %c0_97 = arith.constant 0 : index
      %c0_98 = arith.constant 0 : index
      %154 = vector.load %arg9[%c0_96, %c0_97, %c0_98] : memref<4x8x8xf32, #tpu.memory_space<vmem>>, vector<1x8x8xf32>
      %155 = vector.shape_cast %154 : vector<1x8x8xf32> to vector<8x8xf32>
      %c0_99 = arith.constant 0 : index
      %c0_100 = arith.constant 0 : index
      %c0_101 = arith.constant 0 : index
      %156 = vector.load %arg8[%c0_99, %c0_100, %c0_101] : memref<4x8x1xf32, #tpu.memory_space<vmem>>, vector<1x8x1xf32>
      %157 = vector.shape_cast %156 : vector<1x8x1xf32> to vector<8x1xf32>
      %158 = vector.broadcast %157 : vector<8x1xf32> to vector<8x8xf32>
      %159 = arith.divf %155, %158 : vector<8x8xf32>
      %c1_102 = arith.constant 1 : index
      %c0_103 = arith.constant 0 : index
      %c0_104 = arith.constant 0 : index
      %160 = vector.load %arg9[%c1_102, %c0_103, %c0_104] : memref<4x8x8xf32, #tpu.memory_space<vmem>>, vector<1x8x8xf32>
      %161 = vector.shape_cast %160 : vector<1x8x8xf32> to vector<8x8xf32>
      %c1_105 = arith.constant 1 : index
      %c0_106 = arith.constant 0 : index
      %c0_107 = arith.constant 0 : index
      %162 = vector.load %arg8[%c1_105, %c0_106, %c0_107] : memref<4x8x1xf32, #tpu.memory_space<vmem>>, vector<1x8x1xf32>
      %163 = vector.shape_cast %162 : vector<1x8x1xf32> to vector<8x1xf32>
      %164 = vector.broadcast %163 : vector<8x1xf32> to vector<8x8xf32>
      %165 = arith.divf %161, %164 : vector<8x8xf32>
      %c2_108 = arith.constant 2 : index
      %c0_109 = arith.constant 0 : index
      %c0_110 = arith.constant 0 : index
      %166 = vector.load %arg9[%c2_108, %c0_109, %c0_110] : memref<4x8x8xf32, #tpu.memory_space<vmem>>, vector<1x8x8xf32>
      %167 = vector.shape_cast %166 : vector<1x8x8xf32> to vector<8x8xf32>
      %c2_111 = arith.constant 2 : index
      %c0_112 = arith.constant 0 : index
      %c0_113 = arith.constant 0 : index
      %168 = vector.load %arg8[%c2_111, %c0_112, %c0_113] : memref<4x8x1xf32, #tpu.memory_space<vmem>>, vector<1x8x1xf32>
      %169 = vector.shape_cast %168 : vector<1x8x1xf32> to vector<8x1xf32>
      %170 = vector.broadcast %169 : vector<8x1xf32> to vector<8x8xf32>
      %171 = arith.divf %167, %170 : vector<8x8xf32>
      %c3_114 = arith.constant 3 : index
      %c0_115 = arith.constant 0 : index
      %c0_116 = arith.constant 0 : index
      %172 = vector.load %arg9[%c3_114, %c0_115, %c0_116] : memref<4x8x8xf32, #tpu.memory_space<vmem>>, vector<1x8x8xf32>
      %173 = vector.shape_cast %172 : vector<1x8x8xf32> to vector<8x8xf32>
      %c3_117 = arith.constant 3 : index
      %c0_118 = arith.constant 0 : index
      %c0_119 = arith.constant 0 : index
      %174 = vector.load %arg8[%c3_117, %c0_118, %c0_119] : memref<4x8x1xf32, #tpu.memory_space<vmem>>, vector<1x8x1xf32>
      %175 = vector.shape_cast %174 : vector<1x8x1xf32> to vector<8x1xf32>
      %176 = vector.broadcast %175 : vector<8x1xf32> to vector<8x8xf32>
      %177 = arith.divf %173, %176 : vector<8x8xf32>
      %178 = tpu.concatenate %159, %165, %171, %177 in 1 : vector<8x8xf32>, vector<8x8xf32>, vector<8x8xf32>, vector<8x8xf32> -> vector<8x32xf32>
      %c0_120 = arith.constant 0 : index
      %c0_121 = arith.constant 0 : index
      %c0_122 = arith.constant 0 : index
      %179 = vector.load %arg6[%c0_120, %c0_121, %c0_122] : memref<1x8x32xf32, #tpu.memory_space<vmem>>, vector<1x8x32xf32>
      %180 = vector.shape_cast %179 : vector<1x8x32xf32> to vector<8x32xf32>
      %181 = vector.shape_cast %178 : vector<8x32xf32> to vector<1x8x32xf32>
      tpu.vector_store %arg6[%c0_120, %c0_121, %c0_122], %181 {strides = array<i32>} : memref<1x8x32xf32, #tpu.memory_space<vmem>>, vector<1x8x32xf32>,
    } else {
    }
    return
  }
  func.func @transform_0(%arg0: i32, %arg1: i32, %arg2: i32) -> (i32, i32, i32) {
    %c0_i32 = arith.constant 0 : i32
    %c0_i32_0 = arith.constant 0 : i32
    return %arg0, %arg1, %c0_i32 : i32, i32, i32
  }
  func.func @transform_1(%arg0: i32, %arg1: i32, %arg2: i32) -> (i32, i32, i32) {
    %c0_i32 = arith.constant 0 : i32
    %c0_i32_0 = arith.constant 0 : i32
    return %arg0, %arg2, %c0_i32 : i32, i32, i32
  }
  func.func @transform_2(%arg0: i32, %arg1: i32, %arg2: i32) -> (i32, i32, i32) {
    %c0_i32 = arith.constant 0 : i32
    %c0_i32_0 = arith.constant 0 : i32
    return %arg0, %arg2, %c0_i32 : i32, i32, i32
  }
  func.func @transform_3(%arg0: i32, %arg1: i32, %arg2: i32) -> (i32, i32, i32) {
    %c0_i32 = arith.constant 0 : i32
    %c0_i32_0 = arith.constant 0 : i32
    return %arg0, %arg1, %c0_i32 : i32, i32, i32
  }
}

</mosaic_0001>

<bundles_post_ra>
// kernel: tpu_custom_call.1
= control target key start
LH: loop header
LB: loop body
LE: loop exit
PB: predicated region body
PF: predicated region fallthrough
CT: control target
= control target key end

     0   :  { %s1973_s0 = inlined_call_operand.hbm [shape: f32[2,8,32], index: 0, kind: input, shape index: {}]   ;;  %s1974_s1 = inlined_call_operand.hbm [shape: f32[2,8,32], index: 1, kind: input, shape index: {}]   ;;  %s1975_s2 = inlined_call_operand.hbm [shape: f32[2,8,32], index: 2, kind: input, shape index: {}]   ;;  %s1976_s3 = inlined_call_operand.hbm [shape: f32[2,8,32], index: 3, kind: output, shape index: {}]  }
   0x1   :  { %1980 = sst [smem:[#allocation17_spill]] %s1974_s1 }
   0x2   :  { %8 = vsyncpa [#allocation6], 0 }
   0x3   :  { %10 = vsyncpa [#allocation6 + $0x1], 0 }
   0x4   :  { %11 = vsyncpa [#allocation9], 0 }
   0x5   :  { %13 = vsyncpa [#allocation9 + $0x1], 0 }
   0x6   :  { %14 = vsyncpa [#allocation7], 0 }
   0x7   :  { %16 = vsyncpa [#allocation7 + $0x1], 0  ;;  %s1664_s12 = smov 0   ;;  %s1666_s13 = smov 0  }
   0x8   :  { %s1668_s14 = smov 0   ;;  %s1670_s15 = smov 0  }
   0x9   :  { %s1672_s16 = smov 0   ;;  %s1674_s17 = smov 0  }
   0xa LB: > { %1981 = sst [smem:[#allocation15_spill]] %s1624_s16  ;;  %s1695_s18 = sadd.s32 4294967295, %s1628_s17   ;;  %s1628_s17 = sphi %s1674_s17, %s22_s17   ;;  %s1624_s16 = sphi %s1672_s16, %s1993_s16   ;;  %s1620_s15 = sphi %s1670_s15, %s1992_s15   ;;  %s1616_s14 = sphi %s1668_s14, %s1996_s14   ;;  %s1612_s13 = sphi %s1666_s13, %s1995_s13   ;;  %s1608_s12 = sphi %s1664_s12, %s1994_s12  }
   0xb   : > { %s1266_s19 = sadd.s32 4294967294, %s1628_s17   ;;  %s41_s20 = sadd.s32 1, %s1624_s16 }
   0xc   : > { %s50_s21 = sadd.s32 1, %s1616_s14  ;;  %p43_p0 = scmp.ge.s32.totalorder %s41_s20, 2 }
   0xd   : > { %p57_p1 = scmp.ne.s32.totalorder %s1616_s14, %s1612_s13  ;;  %p58_p2 = scmp.eq.s32.totalorder %s1628_s17, 0 }
   0xe   : > { %p63_p3 = scmp.ne.s32.totalorder %s1612_s13, %s1608_s12  ;;  %s1998_s20 = smov (%p43_p0, %s41_s20), 0 }
   0xf   : > { %1982 = sst [smem:[#allocation16_spill]] %s1998_s20  ;;  %p1707_p4 = por %p58_p2, %p57_p1 }
  0x10   : > { %p64_p5 = scmp.eq.s32.totalorder %s1695_s18, 0  ;;  %s45_s23 = ssub.s32 %s1624_s16, %s1998_s20 }
  0x11   : > { %p145_p6 = scmp.eq.s32.totalorder %s1695_s18, 1  ;;  %p48_p7 = scmp.eq.s32.totalorder %s45_s23, 0 }
  0x12   : > { %p1715_p8 = por %p64_p5, %p63_p3  ;;  %p151_p10 = scmp.eq.s32.totalorder %s1266_s19, 1 }
  0x13   : > { %p1719_p9 = por %p145_p6, %p57_p1  ;;  %p1374_p13 = scmp.lt.s32.totalorder %s1628_s17, 2 }
  0x14   : > { %s1724_s26 = scalar_select %p48_p7, %s1616_s14, %s50_s21  }
  0x15   : > { %p1726_p11 = por %p151_p10, %p63_p3  ;;  %s1977_s28 = sand.u32 1, %s1616_s14  }
  0x16   : > { %s1735_s29 = sshll.u32 %s1977_s28, 3  ;;  %s1738_s30 = sshll.u32 %s1624_s16, 7 }
  0x17   : > { %p1742_p0 = pnand %p1374_p13, %p1707_p4  ;;  %s190_s5 = sand.u32 1, %s1628_s17  }
  0x18   : > { %s1988_s1 = sld [smem:[#allocation17_spill]]  ;;  %s194_s9 = scalar_lea.vmem [#allocation8], %s1735_s29 }
  0x19   : > { %s202_s10 = sshll.u32 %s194_s9, 4  ;;  %p1275_p1 = scmp.ge.s32.totalorder %s1628_s17, 1  ;;  %s203_s10 = int_to_ptr.vmem [resolvable:$true] %s202_s10 }
  0x1a   : > { %p226_p2 = scmp.lt.s32.totalorder %s1628_s17, 3  ;;  %s1754_s11 = scalar_lea.sflag [#allocation9], %s190_s5 }
  0x1b   : > { %p1462_p3 = pneg %p1742_p0  ;;  %s1473_s19 = scalar_lea.vmem %s203_s10, 128 }
  0x1c   : > { %p1474_p4 = scmp.ne.s32.totalorder %s203_s10, %s1473_s19  ;;  %s1630_s21 = smov [#allocation8]  }
  0x1d   : > { %s1478_s22 = sshll.u32 %s1630_s21, 4  ;;  %s1479_s22 = int_to_ptr.vmem [resolvable:$false] %s1478_s22 }
  0x1e   : > { %s200_s8 = scalar_lea.hbm %s1988_s1, %s1738_s30  ;;  %p1476_p5 = pnand %p1474_p4, %p1462_p3 }
  0x1f   : > { %s1480_s23 = scalar_lea.vmem %s1479_s22, 256  ;;  %p1481_p7 = scmp.lt.s32.totalorder %s203_s10, %s1479_s22 }
  0x20   : > { %p1477_p6 = pneg %p1476_p5  ;;  %p1482_p10 = scmp.lt.s32.totalorder %s1480_s23, %s1473_s19 }
  0x22   : > { %p1483_p13 = por %p1482_p10, %p1481_p7 }
  0x24   : > { %p1484_p12 = pnand %p1483_p13, %p1477_p6 }
  0x26   : > { %1487 = shalt.err (!%p1484_p12)
}
  0x27   : > { %1366 = dma.hbm_to_vmem [thread:$0]  (!%p1742_p0), %s200_s8, 128, %s203_s10, %s1754_s11  }
  0x28   : > { %p1768_p4 = pnand %p1275_p1, %p226_p2  ;;  %s181_s9 = scalar_lea.hbm %s1973_s0, %s1738_s30 }
  0x29   : > { %s175_s19 = scalar_lea.vmem [#allocation5], %s1735_s29  ;;  %s219_s28 = scalar_lea.hbm %s1975_s2, %s1738_s30 }
  0x2a   : > { %s183_s21 = sshll.u32 %s175_s19, 4  ;;  %s1990_s1 = sand.u32 1, %s1616_s14   ;;  %s184_s21 = int_to_ptr.vmem [resolvable:$true] %s183_s21 }
  0x2b   : > { %s172_s20 = scalar_lea.sflag [#allocation6], %s1990_s1  ;;  %s1501_s8 = scalar_lea.vmem %s184_s21, 128 }
  0x2c   : > { %p1502_p12 = scmp.ne.s32.totalorder %s184_s21, %s1501_s8  ;;  %s1631_s10 = smov [#allocation5]  }
  0x2d   : > { %s1506_s16 = sshll.u32 %s1631_s10, 4  ;;  %s1507_s16 = int_to_ptr.vmem [resolvable:$false] %s1506_s16 }
  0x2e   : > { %p1504_p1 = pnand %p1502_p12, %p1462_p3  ;;  %s1508_s6 = scalar_lea.vmem %s1507_s16, 256 }
  0x2f   : > { %p1509_p5 = scmp.lt.s32.totalorder %s184_s21, %s1507_s16  ;;  %p1510_p6 = scmp.lt.s32.totalorder %s1508_s6, %s1501_s8 }
  0x30   : > { %p1505_p2 = pneg %p1504_p1 }
  0x31   : > { %p1511_p7 = por %p1510_p6, %p1509_p5 }
  0x33   : > { %p1512_p10 = pnand %p1511_p7, %p1505_p2 }
  0x35   : > { %1515 = shalt.err (!%p1512_p10)
}
  0x36   : > { %1363 = dma.hbm_to_vmem [thread:$0]  (!%p1742_p0), %s181_s9, 128, %s184_s21, %s172_s20  }
  0x37   : > { %s213_s1 = scalar_lea.vmem [#allocation10], %s1735_s29  ;;  %s1632_s22 = smov [#allocation10]  }
  0x38   : > { %s221_s7 = sshll.u32 %s213_s1, 4  ;;  %s1534_s16 = sshll.u32 %s1632_s22, 4  ;;  %s222_s7 = int_to_ptr.vmem [resolvable:$true] %s221_s7  ;;  %s1535_s16 = int_to_ptr.vmem [resolvable:$false] %s1534_s16 }
  0x39   : > { %s1529_s19 = scalar_lea.vmem %s222_s7, 128  ;;  %s1536_s23 = scalar_lea.vmem %s1535_s16, 256 }
  0x3a   : > { %p1530_p13 = scmp.ne.s32.totalorder %s222_s7, %s1529_s19  ;;  %p1537_p2 = scmp.lt.s32.totalorder %s222_s7, %s1535_s16 }
  0x3b   : > { %p1538_p5 = scmp.lt.s32.totalorder %s1536_s23, %s1529_s19 }
  0x3c   : > { %p1532_p12 = pnand %p1530_p13, %p1462_p3 }
  0x3d   : > { %p1539_p6 = por %p1538_p5, %p1537_p2 }
  0x3e   : > { %p1533_p1 = pneg %p1532_p12 }
  0x40   : > { %p1540_p7 = pnand %p1539_p6, %p1533_p1 }
  0x42   : > { %1543 = shalt.err (!%p1540_p7)
}
  0x43   : > { %1369 = dma.hbm_to_vmem [thread:$0]  (!%p1742_p0), %s219_s28, 128, %s222_s7, %s1754_s11  }
  0x44   : > { %230 = sbr.rel (%p1768_p4) target bundleno = 1467 (0x5bb), region = 32  ;;  %s1803_s9 = sand.u32 (!%p1768_p4), 1, %s1612_s13  }
  0x45   : > { %s1806_s21 = sshll.u32 (!%p1768_p4), %s1803_s9, 3  ;;  %s233_s4 = scalar_lea.sflag (!%p1768_p4), [#allocation6], %s1803_s9 }
  0x46   : > { %s236_s8 = scalar_lea.vmem (!%p1768_p4), [#allocation5], %s1806_s21 }
  0x49   : > { %1595 = dma.done.wait (%p1715_p8), %s233_s4, 128  }
  0x4a   : > { %1597 = vsyncadd (%p1715_p8), %s233_s4, 4294967168  ;;  %s241_s28 = sand.u32 1, %s1695_s18   ;;  %s245_s11 = scalar_lea.vmem [#allocation8], %s1806_s21 }
  0x4b   : > { %s242_s30 = scalar_lea.sflag [#allocation9], %s241_s28 }
  0x4c   : > { %1599 = dma.done.wait (%p1715_p8), %s242_s30, 256  }
  0x4d   : > { %1601 = vsyncadd (%p1715_p8), %s242_s30, 4294967040  ;;  %vm300_vm0 = vcmask 64512   ;;  %v1633_v0 = vmov 0.0   ;;  %vm1634_vm1 = vmmov 0   ;;  %v307_v1 = vld [vmem:[%s245_s11] sm:$0xff]  ;;  %v305_v2 = vld [vmem:[%s236_s8] sm:$0xff] }
  0x4e   : > { %1312 = vmatprep.subr.mxu0 %v1633_v0  ;;  %301 = vst.msk [vmem:[#allocation4] sm:$0xff] %vm300_vm0, %v1633_v0  ;;  %302 = vst.msk [vmem:[#allocation4 + $0x8] sm:$0xff] %vm300_vm0, %v1633_v0  ;;  %1314 = vmatprep.mubr.msk.f32.mxu0 %vm1634_vm1, %v1633_v0  ;;  %v306_v3 = vmul.f32 0.35355338, %v305_v2  ;;  %vm291_vm2 = vcmask 7168   ;;  %v1635_v4 = vmov -inf  }
  0x4f   : > { %303 = vst.msk [vmem:[#allocation4 + $0x10] sm:$0xff] %vm300_vm0, %v1633_v0  ;;  %304 = vst.msk [vmem:[#allocation4 + $0x18] sm:$0xff] %vm300_vm0, %v1633_v0  ;;  %1317 = vmatprep.subr.mxu1 %v1633_v0  ;;  %1319 = vmatprep.mubr.msk.f32.mxu1 %vm1634_vm1, %v1633_v0  ;;  %v1636_v8 = vmov 0   ;;  %s1637_s18 = smov 120   ;;  %s1638_s24 = smov 112   ;;  %vm1116_vm3 = vcmask 130048  }
  0x50   : > { %1313 = vmatpush3.xpose.msk.msra.mxu0 %vm300_vm0, %v307_v1  ;;  %292 = vst.msk [vmem:[#allocation2] sm:$0xff] %vm291_vm2, %v1635_v4  ;;  %293 = vst.msk [vmem:[#allocation2 + $0x8] sm:$0xff] %vm291_vm2, %v1635_v4  ;;  %1434 = vset.pattern.permute.xlu0 %v1636_v8  ;;  %s1639_s5 = smov 104   ;;  %s254_s10 = scalar_lea.vmem [#allocation10], %s1806_s21  ;;  %vm1118_vm4 = vcmask 195584   ;;  %vm1120_vm5 = vcmask 261120  }
  0x51   : > { %1327 = vmatprep.subr.mxu0 %v1633_v0  ;;  %294 = vst.msk [vmem:[#allocation2 + $0x10] sm:$0xff] %vm291_vm2, %v1635_v4  ;;  %295 = vst.msk [vmem:[#allocation2 + $0x18] sm:$0xff] %vm291_vm2, %v1635_v4  ;;  %1435 = vset.pattern.permute.xlu1 %v1636_v8  ;;  %v308_v13 = vld [vmem:[%s254_s10] sm:$0xff]  ;;  %s1640_s6 = smov 8   ;;  %s1641_s1 = smov 24  }
  0x52   : > { %296 = vst.msk [vmem:[#allocation3] sm:$0xff] %vm291_vm2, %v1633_v0  ;;  %297 = vst.msk [vmem:[#allocation3 + $0x8] sm:$0xff] %vm291_vm2, %v1633_v0  ;;  %495 = vrot.lane.b32.xlu1 %v307_v1, %s1637_s18  ;;  %1318 = vmatpush3.msra.mxu1 %v308_v13  ;;  %s1642_s7 = smov 16   ;;  %s1293_s19 = sshll.u32 %s1620_s15, 7 }
  0x53   : > { %1315 = vmatmul.mubr.msk.f32.vlgmr.msra.gmra.mxu0 %vm300_vm0, %v306_v3  ;;  %298 = vst.msk [vmem:[#allocation3 + $0x10] sm:$0xff] %vm291_vm2, %v1633_v0  ;;  %299 = vst.msk [vmem:[#allocation3 + $0x18] sm:$0xff] %vm291_vm2, %v1633_v0  ;;  %1322 = vmatprep.subr.mxu1 %v1633_v0  ;;  %s286_s22 = scalar_lea.vmem [#allocation11], %s1806_s21  ;;  %s1931_s29 = scalar_lea.hbm %s1976_s3, %s1293_s19 }
  0x54   : > { %1329 = vmatprep.mubr.msk.f32.mxu0 %vm1634_vm1, %v1633_v0  ;;  %s1137_s16 = sshll.u32 %s286_s22, 4  ;;  %s1123_s4 = scalar_lea.sflag [#allocation7], %s1803_s9  ;;  %s1138_s16 = int_to_ptr.vmem [resolvable:$true] %s1137_s16 }
  0x55   : > { %s1544_s15 = scalar_lea.vmem %s1138_s16, 128  ;;  %s1643_s21 = smov [#allocation11]  }
  0x56   : > { %493 = vrot.lane.b32.xlu1 %v306_v3, %s1637_s18  ;;  %p1545_p8 = scmp.ne.s32.totalorder %s1138_s16, %s1544_s15  ;;  %s1548_s8 = sshll.u32 %s1643_s21, 4  ;;  %s1549_s8 = int_to_ptr.vmem [resolvable:$false] %s1548_s8 }
  0x57   : > { %v1858_v9 = vld [vmem:[#allocation2] sm:$0xff]  ;;  %v572_v35 = vld [vmem:[#allocation2 + $0x8] sm:$0xff]  ;;  %s1550_s28 = scalar_lea.vmem %s1549_s8, 256  ;;  %p1551_p4 = scmp.lt.s32.totalorder %s1138_s16, %s1549_s8 }
  0x58   : > { %v763_v38 = vld [vmem:[#allocation2 + $0x10] sm:$0xff]  ;;  %v953_v42 = vld [vmem:[#allocation2 + $0x18] sm:$0xff]  ;;  %p1546_p0 = pnand %p1545_p8, %p1719_p9  ;;  %p1552_p10 = scmp.lt.s32.totalorder %s1550_s28, %s1544_s15 }
  0x5a   : > { %686 = vrot.lane.b32.xlu1 %v307_v1, %s1638_s24  ;;  %p1547_p3 = pneg %p1546_p0  ;;  %p1553_p13 = por %p1552_p10, %p1551_p4 }
  0x5c   : > { %p1554_p12 = pnand %p1553_p13, %p1547_p3 }
  0x5e   : > { %684 = vrot.lane.b32.xlu1 %v306_v3, %s1638_s24 }
  0x62   : > { %876 = vrot.lane.b32.xlu1 %v307_v1, %s1639_s5 }
  0x66   : > { %874 = vrot.lane.b32.xlu1 %v306_v3, %s1639_s5 }
  0xc4   : > { %v496_v14 = vpop.permute.xlu1 %495 }
  0xc8   : > { %v494_v18 = vpop.permute.xlu1 %493 }
  0xcc   : > { %v687_v19 = vpop.permute.xlu1 %686 }
  0xd0   : > { %v685_v20 = vpop.permute.xlu1 %684 }
  0xd4   : > { %v877_v22 = vpop.permute.xlu1 %876 }
  0xd8   : > { %v875_v23 = vpop.permute.xlu1 %874 }
 0x113   : > { %v382_v5 = vpop.f32.mrf.mxu0 }
 0x114   : > { %v387_v6 = vsel %vm300_vm0, %v382_v5, -inf }
 0x115   : > { %388 = vmax.xlane.f32.xlu0 %v387_v6  ;;  %v1316_v7 = vpop.f32.mrf.mxu0 }
 0x19e   : > { %v389_v10 = vpop.xlane.xlu0 %388 }
 0x19f   : > { %v1861_v11 = vmax.f32 %v1858_v9, %v389_v10 }
 0x1a1   : > { %v391_v12 = vsub.f32 %v1858_v9, %v1861_v11  ;;  %492 = vst.msk [vmem:[#allocation2] sm:$0xff] %vm291_vm2, %v1861_v11  ;;  %396 = vperm.xlu0 %1434, %v1861_v11  }
 0x21c   : > { %v397_v15 = vpop.permute.xlu0 %396 }
 0x21d   : > { %v399_v16 = vsub.f32 %v382_v5, %v397_v15  ;;  %v392_v5 = vmul.f32 1.442695, %v391_v12 }
 0x21f   : > { %v400_v17 = vmul.f32 1.442695, %v399_v16  ;;  %v859_v16 = vld [vmem:[#allocation3 + $0x10] sm:$0xff] }
 0x221   : > { %1436 = vpow2.f32 %v400_v17  ;;  %v478_v17 = vld [vmem:[#allocation3] sm:$0xff] }
 0x22e   : > { %v1870_v21 = vpop.eup %1436 }
 0x22f   : > { %1320 = vmatmul.mubr.msk.f32.vlgmr.msra.gmra.mxu1 %vm300_vm0, %v1870_v21  ;;  %v402_v1 = vsel %vm300_vm0, %v1870_v21, 0.0 }
 0x230   : > { %1323 = vmatpush3.xpose.msk.msra.mxu1 %vm300_vm0, %v496_v14  ;;  %1324 = vmatprep.mubr.msk.f32.mxu1 %vm1634_vm1, %v1633_v0 }
 0x231   : > { %1332 = vmatprep.subr.mxu1 %v1633_v0 }
 0x233   : > { %1325 = vmatmul.mubr.msk.f32.vlgmr.msra.gmra.mxu1 %vm300_vm0, %v494_v18 }
 0x234   : > { %1333 = vmatpush3.xpose.msk.msra.mxu1 %vm300_vm0, %v687_v19  ;;  %1334 = vmatprep.mubr.msk.f32.mxu1 %vm1634_vm1, %v1633_v0 }
 0x235   : > { %1342 = vmatprep.subr.mxu1 %v1633_v0 }
 0x237   : > { %1335 = vmatmul.mubr.msk.f32.vlgmr.msra.gmra.mxu1 %vm300_vm0, %v685_v20  ;;  %v1049_v20 = vld [vmem:[#allocation3 + $0x18] sm:$0xff] }
 0x238   : > { %1343 = vmatpush3.xpose.msk.msra.mxu1 %vm300_vm0, %v877_v22  ;;  %1344 = vmatprep.mubr.msk.f32.mxu1 %vm1634_vm1, %v1633_v0 }
 0x23b   : > { %1345 = vmatmul.mubr.msk.f32.vlgmr.msra.gmra.mxu1 %vm300_vm0, %v875_v23 }
 0x2ef   : > { %v1888_v24 = vpop.f32.mrf.mxu1 }
 0x2f1   : > { %v1321_v25 = vpop.f32.mrf.mxu1 }
 0x2f3   : > { %v567_v26 = vpop.f32.mrf.mxu1 }
 0x2f4   : > { %v573_v27 = vsel %vm300_vm0, %v567_v26, -inf }
 0x2f5   : > { %574 = vmax.xlane.f32.xlu1 %v573_v27  ;;  %v1326_v28 = vpop.f32.mrf.mxu1 }
 0x2f7   : > { %v758_v29 = vpop.f32.mrf.mxu1 }
 0x2f8   : > { %v764_v30 = vsel %vm300_vm0, %v758_v29, -inf }
 0x2f9   : > { %765 = vmax.xlane.f32.xlu0 %v764_v30  ;;  %v1336_v31 = vpop.f32.mrf.mxu1 }
 0x2fb   : > { %v948_v32 = vpop.f32.mrf.mxu1 }
 0x2fc   : > { %v954_v33 = vsel %vm300_vm0, %v948_v32, -inf }
 0x2fd   : > { %955 = vmax.xlane.f32.xlu1 %v954_v33  ;;  %v1346_v34 = vpop.f32.mrf.mxu1 }
 0x37e   : > { %v575_v36 = vpop.xlane.xlu1 %574 }
 0x37f   : > { %v576_v37 = vmax.f32 %v572_v35, %v575_v36  ;;  %v674_v36 = vld [vmem:[#allocation4 + $0x8] sm:$0xff] }
 0x381   : > { %v577_v39 = vsub.f32 %v572_v35, %v576_v37  ;;  %683 = vst.msk [vmem:[#allocation2 + $0x8] sm:$0xff] %vm291_vm2, %v576_v37  ;;  %582 = vperm.xlu1 %1435, %v576_v37  }
 0x382   : > { %v766_v40 = vpop.xlane.xlu0 %765 }
 0x383   : > { %v767_v41 = vmax.f32 %v763_v38, %v766_v40  ;;  %v578_v62 = vmul.f32 1.442695, %v577_v39 }
 0x385   : > { %v768_v43 = vsub.f32 %v763_v38, %v767_v41  ;;  %873 = vst.msk [vmem:[#allocation2 + $0x10] sm:$0xff] %vm291_vm2, %v767_v41  ;;  %773 = vperm.xlu0 %1434, %v767_v41   ;;  %v864_v38 = vld [vmem:[#allocation4 + $0x10] sm:$0xff] }
 0x386   : > { %v956_v44 = vpop.xlane.xlu1 %955 }
 0x387   : > { %v957_v45 = vmax.f32 %v953_v42, %v956_v44  ;;  %v769_v3 = vmul.f32 1.442695, %v768_v43  ;;  %v1054_v44 = vld [vmem:[#allocation4 + $0x18] sm:$0xff] }
 0x389   : > { %v958_v46 = vsub.f32 %v953_v42, %v957_v45  ;;  %1063 = vst.msk [vmem:[#allocation2 + $0x18] sm:$0xff] %vm291_vm2, %v957_v45  ;;  %963 = vperm.xlu1 %1435, %v957_v45  }
 0x38b   : > { %v959_v6 = vmul.f32 1.442695, %v958_v46 }
 0x38d   : > { %592 = vrot.lane.b32.xlu1 %v308_v13, %s1637_s18 }
 0x391   : > { %782 = vrot.lane.b32.xlu1 %v308_v13, %s1638_s24 }
 0x395   : > { %972 = vrot.lane.b32.xlu1 %v308_v13, %s1639_s5  ;;  %v669_v13 = vld [vmem:[#allocation3 + $0x8] sm:$0xff] }
 0x3fc   : > { %v583_v47 = vpop.permute.xlu1 %582 }
 0x3fd   : > { %v585_v48 = vsub.f32 %v567_v26, %v583_v47 }
 0x3ff   : > { %v586_v49 = vmul.f32 1.442695, %v585_v48 }
 0x400   : > { %v774_v50 = vpop.permute.xlu0 %773 }
 0x401   : > { %1438 = vpow2.f32 %v586_v49  ;;  %v776_v51 = vsub.f32 %v758_v29, %v774_v50  ;;  %v483_v29 = vld [vmem:[#allocation4] sm:$0xff] }
 0x403   : > { %v777_v52 = vmul.f32 1.442695, %v776_v51 }
 0x404   : > { %v964_v53 = vpop.permute.xlu1 %963 }
 0x405   : > { %1440 = vpow2.f32 %v777_v52  ;;  %v966_v54 = vsub.f32 %v948_v32, %v964_v53 }
 0x407   : > { %v967_v55 = vmul.f32 1.442695, %v966_v54 }
 0x408   : > { %v593_v56 = vpop.permute.xlu1 %592 }
 0x409   : > { %1442 = vpow2.f32 %v967_v55  ;;  %1328 = vmatpush3.msra.mxu0 %v593_v56 }
 0x40a   : > { %1337 = vmatprep.subr.mxu0 %v1633_v0  ;;  %1444 = vpow2.f32 %v578_v62 }
 0x40b   : > { %1446 = vpow2.f32 %v769_v3 }
 0x40c   : > { %v783_v57 = vpop.permute.xlu1 %782  ;;  %1448 = vpow2.f32 %v392_v5 }
 0x40d   : > { %1450 = vpow2.f32 %v959_v6 }
 0x40e   : > { %v1439_v58 = vpop.eup %1438 }
 0x40f   : > { %1330 = vmatmul.mubr.msk.f32.vlgmr.msra.gmra.mxu0 %vm300_vm0, %v1439_v58  ;;  %v588_v59 = vsel %vm300_vm0, %v1439_v58, 0.0 }
 0x410   : > { %589 = vadd.xlane.f32.xlu1 %v588_v59  ;;  %1338 = vmatpush3.msra.mxu0 %v783_v57  ;;  %v973_v61 = vpop.permute.xlu1 %972 }
 0x411   : > { %1339 = vmatprep.mubr.msk.f32.mxu0 %vm1634_vm1, %v1633_v0  ;;  %1347 = vmatprep.subr.mxu0 %v1633_v0 }
 0x412   : > { %v1441_v60 = vpop.eup %1440 }
 0x413   : > { %1340 = vmatmul.mubr.msk.f32.vlgmr.msra.gmra.mxu0 %vm300_vm0, %v1441_v60  ;;  %v779_v63 = vsel %vm300_vm0, %v1441_v60, 0.0 }
 0x414   : > { %780 = vadd.xlane.f32.xlu0 %v779_v63  ;;  %403 = vadd.xlane.f32.xlu1 %v402_v1 }
 0x415   : > { %1348 = vmatpush3.msra.mxu0 %v973_v61  ;;  %1349 = vmatprep.mubr.msk.f32.mxu0 %vm1634_vm1, %v1633_v0 }
 0x416   : > { %v1443_v2 = vpop.eup %1442 }
 0x417   : > { %1350 = vmatmul.mubr.msk.f32.vlgmr.msra.gmra.mxu0 %vm300_vm0, %v1443_v2  ;;  %v969_v4 = vsel %vm300_vm0, %v1443_v2, 0.0  ;;  %v1445_v7 = vpop.eup %1444 }
 0x418   : > { %970 = vadd.xlane.f32.xlu0 %v969_v4  ;;  %v1447_v8 = vpop.eup %1446  ;;  %v670_v14 = vmul.f32 %v1445_v7, %v669_v13 }
 0x419   : > { %v1449_v0 = vpop.eup %1448  ;;  %v860_v9 = vmul.f32 %v1447_v8, %v859_v16 }
 0x41a   : > { %v1451_v10 = vpop.eup %1450  ;;  %v479_v11 = vmul.f32 %v1449_v0, %v478_v17 }
 0x41b   : > { %v1050_v23 = vmul.f32 %v1451_v10, %v1049_v20 }
 0x425   : > { %677 = vperm.xlu1 %1435, %v1445_v7  }
 0x429   : > { %867 = vperm.xlu1 %1435, %v1447_v8  }
 0x42e   : > { %486 = vperm.xlu0 %1434, %v1449_v0  }
 0x432   : > { %1057 = vperm.xlu0 %1434, %v1451_v10  }
 0x499   : > { %v590_v15 = vpop.xlane.xlu1 %589 }
 0x49a   : > { %v671_v18 = vadd.f32 %v670_v14, %v590_v15 }
 0x49c   : > { %672 = vst.msk [vmem:[#allocation3 + $0x8] sm:$0xff] %vm291_vm2, %v671_v18 }
 0x49d   : > { %v781_v12 = vpop.xlane.xlu0 %780  ;;  %v404_v19 = vpop.xlane.xlu1 %403 }
 0x49e   : > { %v861_v21 = vadd.f32 %v860_v9, %v781_v12  ;;  %v480_v22 = vadd.f32 %v479_v11, %v404_v19 }
 0x4a0   : > { %862 = vst.msk [vmem:[#allocation3 + $0x10] sm:$0xff] %vm291_vm2, %v861_v21  ;;  %482 = vst.msk [vmem:[#allocation3] sm:$0xff] %vm291_vm2, %v480_v22 }
 0x4a1   : > { %v971_v25 = vpop.xlane.xlu0 %970  ;;  %v678_v35 = vpop.permute.xlu1 %677 }
 0x4a2   : > { %v1051_v26 = vadd.f32 %v1050_v23, %v971_v25  ;;  %v680_v37 = vmul.f32 %v678_v35, %v674_v36 }
 0x4a3   : > { %v1077_v27 = vld [vmem:[#allocation3 + $0x8] sm:$0xff] }
 0x4a4   : > { %1052 = vst.msk [vmem:[#allocation3 + $0x18] sm:$0xff] %vm291_vm2, %v1051_v26  ;;  %1080 = vperm.xlu0 %1434, %v1077_v27  }
 0x4a5   : > { %v868_v39 = vpop.permute.xlu1 %867 }
 0x4a6   : > { %v870_v43 = vmul.f32 %v868_v39, %v864_v38 }
 0x4a7   : > { %v1068_v28 = vld [vmem:[#allocation3] sm:$0xff]  ;;  %v1086_v33 = vld [vmem:[#allocation3 + $0x10] sm:$0xff] }
 0x4a8   : > { %1071 = vperm.xlu1 %1435, %v1068_v28  }
 0x4a9   : > { %v487_v30 = vpop.permute.xlu0 %486 }
 0x4aa   : > { %v489_v31 = vmul.f32 %v487_v30, %v483_v29 }
 0x4ab   : > { %v1095_v32 = vld [vmem:[#allocation3 + $0x18] sm:$0xff] }
 0x4ac   : > { %v490_v34 = vadd.f32 %v489_v31, %v1888_v24  ;;  %1098 = vperm.xlu0 %1434, %v1095_v32   ;;  %1089 = vperm.xlu1 %1435, %v1086_v33  }
 0x4ad   : > { %v1058_v45 = vpop.permute.xlu0 %1057 }
 0x4ae   : > { %491 = vst.msk [vmem:[#allocation4] sm:$0xff] %vm300_vm0, %v490_v34  ;;  %v1060_v48 = vmul.f32 %v1058_v45, %v1054_v44 }
 0x4b5   : > { %v1067_v4 = vld [vmem:[#allocation4] sm:$0xff] }
 0x4cf   : > { %v664_v40 = vpop.f32.mrf.mxu0 }
 0x4d0   : > { %v681_v41 = vadd.f32 %v680_v37, %v664_v40 }
 0x4d1   : > { %v1331_v42 = vpop.f32.mrf.mxu0 }
 0x4d2   : > { %682 = vst.msk [vmem:[#allocation4 + $0x8] sm:$0xff] %vm300_vm0, %v681_v41 }
 0x4d3   : > { %v854_v46 = vpop.f32.mrf.mxu0 }
 0x4d4   : > { %v871_v47 = vadd.f32 %v870_v43, %v854_v46 }
 0x4d5   : > { %v1341_v24 = vpop.f32.mrf.mxu0 }
 0x4d6   : > { %872 = vst.msk [vmem:[#allocation4 + $0x10] sm:$0xff] %vm300_vm0, %v871_v47 }
 0x4d7   : > { %v1044_v49 = vpop.f32.mrf.mxu0 }
 0x4d8   : > { %v1061_v50 = vadd.f32 %v1060_v48, %v1044_v49 }
 0x4d9   : > { %v1351_v51 = vpop.f32.mrf.mxu0  ;;  %v1076_v57 = vld [vmem:[#allocation4 + $0x8] sm:$0xff] }
 0x4da   : > { %1062 = vst.msk [vmem:[#allocation4 + $0x18] sm:$0xff] %vm300_vm0, %v1061_v50 }
 0x4dd   : > { %v1085_v63 = vld [vmem:[#allocation4 + $0x10] sm:$0xff] }
 0x4e1   : > { %v1094_v60 = vld [vmem:[#allocation4 + $0x18] sm:$0xff] }
 0x51f   : > { %v1081_v52 = vpop.permute.xlu0 %1080 }
 0x520   : > { %1452 = vrcp.f32 %v1081_v52 }
 0x523   : > { %v1072_v53 = vpop.permute.xlu1 %1071 }
 0x527   : > { %v1099_v54 = vpop.permute.xlu0 %1098  ;;  %v1090_v55 = vpop.permute.xlu1 %1089 }
 0x528   : > { %1454 = vrcp.f32 %v1099_v54 }
 0x529   : > { %1456 = vrcp.f32 %v1090_v55 }
 0x52a   : > { %1458 = vrcp.f32 %v1072_v53 }
 0x52d   : > { %v1453_v56 = vpop.eup %1452 }
 0x52e   : > { %v1084_v58 = vmul.f32 %v1453_v56, %v1076_v57 }
 0x530   : > { %1104 = vrot.lane.b32.xlu1 %v1084_v58, %s1640_s6 }
 0x535   : > { %v1455_v59 = vpop.eup %1454 }
 0x536   : > { %v1457_v61 = vpop.eup %1456  ;;  %v1102_v62 = vmul.f32 %v1455_v59, %v1094_v60 }
 0x537   : > { %v1093_v1 = vmul.f32 %v1457_v61, %v1085_v63  ;;  %v1459_v2 = vpop.eup %1458 }
 0x538   : > { %1112 = vrot.lane.b32.xlu1 %v1102_v62, %s1641_s1  ;;  %v1075_v5 = vmul.f32 %v1459_v2, %v1067_v4 }
 0x539   : > { %1108 = vrot.lane.b32.xlu0 %v1093_v1, %s1642_s7 }
 0x5a2   : > { %v1105_v3 = vpop.permute.xlu1 %1104 }
 0x5a3   : > { %v1115_v7 = vsel %vm300_vm0, %v1075_v5, %v1105_v3 }
 0x5aa   : > { %v1113_v6 = vpop.permute.xlu1 %1112 }
 0x5ab   : > { %v1109_v8 = vpop.permute.xlu0 %1108 }
 0x5ac   : > { %v1117_v0 = vsel %vm1116_vm3, %v1115_v7, %v1109_v8 }
 0x5ad   : > { %v1119_v10 = vsel %vm1118_vm4, %v1117_v0, %v1113_v6 }
 0x5ae   : > { %1121 = vst.msk [vmem:[%s286_s22] sm:$0xff] %vm1120_vm5, %v1119_v10 }
 0x5af   : > { %1557 = shalt.err (!%p1554_p12)
}
 0x5b0   : > { %s1558_s30 = scalar_lea.hbm %s1931_s29, 128  ;;  %s1562_s18 = scalar_lea.hbm %s1976_s3, 256 }
 0x5b1   : > { %p1559_p1 = scmp.ne.s32.totalorder %s1931_s29, %s1558_s30  ;;  %p1563_p6 = scmp.lt.s32.totalorder %s1931_s29, %s1976_s3 }
 0x5b2   : > { %p1564_p7 = scmp.lt.s32.totalorder %s1562_s18, %s1558_s30 }
 0x5b3   : > { %p1560_p2 = pnand %p1559_p1, %p1719_p9 }
 0x5b4   : > { %p1565_p8 = por %p1564_p7, %p1563_p6 }
 0x5b5   : > { %p1561_p5 = pneg %p1560_p2 }
 0x5b7   : > { %p1566_p0 = pnand %p1565_p8, %p1561_p5 }
 0x5b9   : > { %1569 = shalt.err (!%p1566_p0)
}
 0x5ba   : > { %1358 = dma.vmem_to_hbm [thread:$0]  (%p1719_p9), %s1138_s16, 128, %s1931_s29, %s1123_s4  }
 0x5bb PF: > { %s1149_s10 = sand.u32 1, %s1608_s12   ;;  %p1991_p3 = scmp.ge.s32.totalorder %s1628_s17, 2 }
 0x5bc   : > { %s1150_s6 = scalar_lea.sflag [#allocation7], %s1149_s10 }
 0x5bd   : > { %p1371_p4 = pnand %p1991_p3, %p1726_p11 }
 0x5bf   : > { %p1372_p10 = pneg %p1371_p4 }
 0x5c1   : > { %1603 = dma.done.wait (%p1372_p10), %s1150_s6, 128  }
 0x5c2   : > { %1605 = vsyncadd (%p1372_p10), %s1150_s6, 4294967168  ;;  %s22_s17 = sadd.s32 1, %s1628_s17   ;;  %s1992_s15 = sld [smem:[#allocation15_spill]] }
 0x5c3   : > { %p19_p13 = scmp.ge.s32.totalorder %s22_s17, 4   ;;  %s1993_s16 = sld [smem:[#allocation16_spill]] }
 0x5c4   : > { %s1994_s12 = smov %s1612_s13  ;;  %s1995_s13 = smov %s1616_s14 }
 0x5c5   : > { %s1996_s14 = smov %s1724_s26  ;;  %21 = sbr.rel (!%p19_p13) target bundleno = 10 (0xa), region = 118 }
 0x5ca   :  { %1155 = vsyncpa [#allocation6], 1 }
 0x5cb   :  { %1157 = vsyncpa [#allocation6 + $0x1], 1 }
 0x5cc   :  { %1158 = vsyncpa [#allocation9], 1 }
 0x5cd   :  { %1160 = vsyncpa [#allocation9 + $0x1], 1 }
 0x5ce   :  { %1161 = vsyncpa [#allocation7], 1 }
 0x5cf   :  { %1163 = vsyncpa [#allocation7 + $0x1], 1 }

</bundles_post_ra>
